<compile_context>
chip_gen: v7x
topology: tpu7x:2x2x1
jax: 0.10.0
libtpu: 0.0.40
codegen_flags: <defaults>
</compile_context>

<pallas_src>
import functools
import math

import jax
import jax.numpy as jnp
from jax import lax
from jax.experimental import pallas as pl
from jax.experimental.pallas import tpu as pltpu


def _round_up(x, m):
    return ((x + m - 1) // m) * m


# --------------------------- fused projection matmul -------------------------

def _matmul_bias_kernel(x_ref, w_ref, b_ref, o_ref):
    acc = jnp.dot(x_ref[...], w_ref[...], preferred_element_type=jnp.float32)
    o_ref[...] = (acc + b_ref[...].astype(jnp.float32)).astype(o_ref.dtype)


def matmul_bias(x, w, b, *, tm=256, vmem_limit_bytes=None):
    """x:(M,K) @ w:(K,N) + b:(N,) -> (M,N). f32 accumulation on the MXU."""
    M, K = x.shape
    Kw, N = w.shape
    assert K == Kw
    tm = min(tm, _round_up(M, 8))          # big tiles, but never bigger than the problem
    m_pad = _round_up(M, tm)
    x_p = jnp.pad(x, ((0, m_pad - M), (0, 0))) if m_pad != M else x
    w = w.astype(x.dtype)
    b2 = b.reshape(1, N).astype(x.dtype)

    out = pl.pallas_call(
        _matmul_bias_kernel,
        out_shape=jax.ShapeDtypeStruct((m_pad, N), x.dtype),
        grid_spec=pltpu.PrefetchScalarGridSpec(
            num_scalar_prefetch=0,
            grid=(m_pad // tm,),
            in_specs=[
                pl.BlockSpec((tm, K), lambda i: (i, 0)),   # activation tile
                pl.BlockSpec((K, N), lambda i: (0, 0)),    # weight, resident across M
                pl.BlockSpec((1, N), lambda i: (0, 0)),    # bias, resident
            ],
            out_specs=pl.BlockSpec((tm, N), lambda i: (i, 0)),
        ),
        compiler_params=pltpu.CompilerParams(
            dimension_semantics=("parallel",),
            vmem_limit_bytes=vmem_limit_bytes),
        cost_estimate=pl.CostEstimate(
            flops=2 * m_pad * K * N,
            transcendentals=0,
            bytes_accessed=(m_pad * K + K * N + m_pad * N) * x.dtype.itemsize),
    )(x_p, w, b2)
    return out[:M] if m_pad != M else out


# --------------------------- softmax attention kernel ------------------------

def _sdpa_kernel(*refs, scale, has_mask):
    if has_mask:
        q_ref, k_ref, v_ref, m_ref, o_ref = refs
    else:
        q_ref, k_ref, v_ref, o_ref = refs
    q = q_ref[...]                                           # (tq, Dh)
    k = k_ref[...]                                           # (T,  Dh)
    v = v_ref[...]                                           # (T,  Dh)
    s = jnp.dot(q, k.T, preferred_element_type=jnp.float32) * scale   # (tq, T)
    if has_mask:
        s = s + m_ref[...].astype(jnp.float32)
    s_max = jnp.max(s, axis=-1, keepdims=True)
    p = jnp.exp(s - s_max)
    denom = jnp.sum(p, axis=-1, keepdims=True)
    probs = p / denom
    ctx = jnp.dot(probs.astype(v.dtype), v, preferred_element_type=jnp.float32)
    o_ref[...] = ctx.astype(o_ref.dtype)


def sdpa(q, k, v, mask=None, *, scale, tq=256, vmem_limit_bytes=None):
    """q:(B,H,S,Dh), k/v:(B,H,T,Dh), mask:(B,S,T) additive or None -> (B,H,S,Dh)."""
    B, H, S, Dh = q.shape
    T = k.shape[2]
    tq = min(tq, _round_up(S, 8))
    s_pad = _round_up(S, tq)
    if s_pad != S:
        q = jnp.pad(q, ((0, 0), (0, 0), (0, s_pad - S), (0, 0)))
    has_mask = mask is not None

    in_specs = [
        pl.BlockSpec((None, None, tq, Dh), lambda b, h, i: (b, h, i, 0)),
        pl.BlockSpec((None, None, T, Dh), lambda b, h, i: (b, h, 0, 0)),
        pl.BlockSpec((None, None, T, Dh), lambda b, h, i: (b, h, 0, 0)),
    ]
    args = [q, k, v]
    if has_mask:
        mask = mask.astype(jnp.float32)
        if s_pad != S:
            mask = jnp.pad(mask, ((0, 0), (0, s_pad - S), (0, 0)))
        in_specs.append(pl.BlockSpec((None, tq, T), lambda b, h, i: (b, i, 0)))
        args.append(mask)

    out = pl.pallas_call(
        functools.partial(_sdpa_kernel, scale=float(scale), has_mask=has_mask),
        out_shape=jax.ShapeDtypeStruct((B, H, s_pad, Dh), q.dtype),
        grid_spec=pltpu.PrefetchScalarGridSpec(
            num_scalar_prefetch=0,
            grid=(B, H, s_pad // tq),
            in_specs=in_specs,
            out_specs=pl.BlockSpec((None, None, tq, Dh), lambda b, h, i: (b, h, i, 0)),
        ),
        compiler_params=pltpu.CompilerParams(
            dimension_semantics=("parallel", "parallel", "parallel"),
            vmem_limit_bytes=vmem_limit_bytes),
        cost_estimate=pl.CostEstimate(
            flops=4 * B * H * s_pad * T * Dh,
            transcendentals=B * H * s_pad * T,
            bytes_accessed=(2 * B * H * s_pad * Dh + 2 * B * H * T * Dh
                            + (B * s_pad * T if has_mask else 0)) * q.dtype.itemsize),
    )(*args)
    return out[:, :, :S] if s_pad != S else out


# ------------------------------ forward wrapper -------------------------------

def bert_self_attention_forward(params, hidden_states, attention_mask=None,
                                head_mask=None, output_attentions=False,
                                visual_hidden_state=None, output_qks=None,
                                vmem_limit_bytes=None):
    B, S, D = hidden_states.shape
    H = int(params["num_heads"])
    Dh = D // H
    dtype = hidden_states.dtype
    vw = params["visual_kv_weight"].astype(jnp.float32)

    # ---- 1. one fused projection: [ q | k | v | vw*clip_k | vw*clip_v ] ------
    # vw*(x W^T + b) == x (vw W)^T + vw b, so the clip-kv scaling is folded in.
    w_cat = jnp.concatenate(
        [params["query_w"].T, params["key_w"].T, params["value_w"].T,
         vw * params["clip_k_w"].T, vw * params["clip_v_w"].T], axis=1)       # (D, 5D)
    b_cat = jnp.concatenate(
        [params["query_b"], params["key_b"], params["value_b"],
         vw * params["clip_k_b"], vw * params["clip_v_b"]])                   # (5D,)
    proj = matmul_bias(hidden_states.reshape(B * S, D), w_cat, b_cat,
                       vmem_limit_bytes=vmem_limit_bytes)                     # (B*S, 5D)
    q2, k2, v2, ck2, cv2 = jnp.split(proj, 5, axis=-1)

    def to_heads(t):                                    # (B*S, D) -> (B, H, S, Dh)
        return t.reshape(B, S, H, Dh).transpose(0, 2, 1, 3)

    query_layer = to_heads(q2)
    key_layer = jnp.concatenate([to_heads(ck2), to_heads(k2)], axis=2)        # (B,H,2S,Dh)
    value_layer = jnp.concatenate([to_heads(cv2), to_heads(v2)], axis=2)
    qks = (key_layer, value_layer) if output_qks else None

    # ---- 2. masked softmax attention (Pallas) --------------------------------
    T = key_layer.shape[2]
    mask = None
    if attention_mask is not None:
        m = jnp.asarray(attention_mask)
        if m.ndim == 4:          # standard BERT additive mask (B, 1, 1 or S, T)
            m = m[:, 0]
        mask = jnp.broadcast_to(m, (B, S, T))
    # TODO(synk): attention-prob dropout and head_mask are training-mode features and
    # are not implemented (eval-mode forward semantics only).
    ctx = sdpa(query_layer, key_layer, value_layer, mask,
               scale=1.0 / math.sqrt(Dh), vmem_limit_bytes=vmem_limit_bytes)
    context_layer = ctx.transpose(0, 2, 1, 3).reshape(B, S, D)

    # ---- 3. BertFusion: softmax cross-attention onto visual_hidden_state -----
    fusion_output = None
    if visual_hidden_state is not None:
        vis = visual_hidden_state.astype(dtype)
        fusion_output = sdpa(context_layer[:, None], vis[:, None], vis[:, None],
                             None, scale=1.0, vmem_limit_bytes=vmem_limit_bytes)[:, 0]

    # TODO(synk): output_attentions=True (returning softmax probs) would need a second
    # kernel output; only the context is returned here.
    outputs = (context_layer,)
    return outputs, fusion_output, qks


# ------------------------------ params & reference ----------------------------

def init_params(key, *, hidden_size, num_heads, w_scale=0.2):
    ks = jax.random.split(key, 10)

    def lin(kw, kb):
        return (jax.random.normal(kw, (hidden_size, hidden_size), jnp.float32) * w_scale,
                jax.random.normal(kb, (hidden_size,), jnp.float32) * w_scale)

    qw, qb = lin(ks[0], ks[1]); kw_, kb_ = lin(ks[2], ks[3]); vw_, vb_ = lin(ks[4], ks[5])
    ckw, ckb = lin(ks[6], ks[7]); cvw, cvb = lin(ks[8], ks[9])
    return dict(num_heads=num_heads,
                query_w=qw, query_b=qb, key_w=kw_, key_b=kb_, value_w=vw_, value_b=vb_,
                clip_k_w=ckw, clip_k_b=ckb, clip_v_w=cvw, clip_v_b=cvb,
                visual_kv_weight=jnp.float32(1.0))


def _ref_forward(params, hidden_states, attention_mask=None, visual_hidden_state=None):
    """Pure-JAX reference mirroring the PyTorch forward (eval mode)."""
    B, S, D = hidden_states.shape
    H = int(params["num_heads"]); Dh = D // H
    P = lax.Precision.HIGHEST

    def linear(x, w, b):
        return jnp.einsum("bsd,ed->bse", x, w, precision=P) + b

    q = linear(hidden_states, params["query_w"], params["query_b"])
    k = linear(hidden_states, params["key_w"], params["key_b"])
    v = linear(hidden_states, params["value_w"], params["value_b"])
    ck = linear(hidden_states, params["clip_k_w"], params["clip_k_b"])
    cv = linear(hidden_states, params["clip_v_w"], params["clip_v_b"])

    def heads(t):
        return t.reshape(B, S, H, Dh).transpose(0, 2, 1, 3)

    q, k, v, ck, cv = map(heads, (q, k, v, ck, cv))
    vw = params["visual_kv_weight"]
    key_layer = jnp.concatenate([vw * ck, k], axis=2)
    value_layer = jnp.concatenate([vw * cv, v], axis=2)

    scores = jnp.einsum("bhqd,bhkd->bhqk", q, key_layer, precision=P) / math.sqrt(Dh)
    if attention_mask is not None:
        scores = scores + attention_mask
    probs = jax.nn.softmax(scores, axis=-1)
    ctx = jnp.einsum("bhqk,bhkd->bhqd", probs, value_layer, precision=P)
    ctx = ctx.transpose(0, 2, 1, 3).reshape(B, S, D)

    fusion = None
    if visual_hidden_state is not None:
        fs = jnp.einsum("bsd,btd->bst", ctx, visual_hidden_state, precision=P)
        fp = jax.nn.softmax(fs, axis=-1)
        fusion = jnp.einsum("bst,btd->bsd", fp, visual_hidden_state, precision=P)
    return ctx, fusion, (key_layer, value_layer)


if __name__ == "__main__":
    B, S, D, H, SV = 2, 8, 32, 4, 6
    key = jax.random.PRNGKey(0)
    kp, kh, kvz, km = jax.random.split(key, 4)

    params = init_params(kp, hidden_size=D, num_heads=H)
    params["visual_kv_weight"] = jnp.float32(0.75)   # exercise the clip-kv scaling path

    hidden_states = jax.random.normal(kh, (B, S, D), jnp.float32)
    visual_hidden_state = jax.random.normal(kvz, (B, SV, D), jnp.float32)
    T = 2 * S                                         # clip kv prepended -> doubled key len
    keep = (jax.random.uniform(km, (B, 1, 1, T)) > 0.15).astype(jnp.float32)
    attention_mask = (1.0 - keep) * -10000.0          # BERT-style additive mask

    outputs, fusion_output, qks = bert_self_attention_forward(
        params, hidden_states, attention_mask=attention_mask,
        visual_hidden_state=visual_hidden_state, output_qks=True)
    context_layer = outputs[0]
    context_layer, fusion_output, qks = jax.block_until_ready(
        (context_layer, fusion_output, qks))

    assert context_layer.shape == (B, S, D), context_layer.shape
    assert fusion_output.shape == (B, S, D), fusion_output.shape
    assert qks[0].shape == (B, H, T, D // H) and qks[1].shape == (B, H, T, D // H)

    ref_ctx, ref_fusion, ref_qks = _ref_forward(
        params, hidden_states, attention_mask, visual_hidden_state)
    assert jnp.allclose(context_layer, ref_ctx, atol=2e-3, rtol=2e-3), \
        float(jnp.max(jnp.abs(context_layer - ref_ctx)))
    assert jnp.allclose(fusion_output, ref_fusion, atol=2e-3, rtol=2e-3), \
        float(jnp.max(jnp.abs(fusion_output - ref_fusion)))
    assert jnp.allclose(qks[0], ref_qks[0], atol=2e-3, rtol=2e-3)
    assert jnp.allclose(qks[1], ref_qks[1], atol=2e-3, rtol=2e-3)

    print("KERNEL_OK")
</pallas_src>

<mosaic_0001>
module attributes {stable_mosaic.version = 11 : i64} {
  func.func @_matmul_bias_kernel(%arg0: i32, %arg1: memref<16x32xf32, #tpu.memory_space<vmem>>, %arg2: memref<32x160xf32, #tpu.memory_space<vmem>>, %arg3: memref<1x160xf32, #tpu.memory_space<vmem>>, %arg4: memref<16x160xf32, #tpu.memory_space<vmem>>) attributes {dimension_semantics = [#tpu.dimension_semantics<parallel>], iteration_bounds = array<i64: 1>, scalar_prefetch = 0 : i64, scratch_operands = 0 : i64, tpu.core_type = #tpu.core_type<tc>, window_params = [{transform_indices = @transform_0, window_bounds = array<i64: 16, 32>}, {pipeline_mode = #tpu.pipeline_mode<synchronous>, transform_indices = @transform_1, window_bounds = array<i64: 32, 160>}, {pipeline_mode = #tpu.pipeline_mode<synchronous>, transform_indices = @transform_2, window_bounds = array<i64: 1, 160>}, {transform_indices = @transform_3, window_bounds = array<i64: 16, 160>}]} {
    %c0 = arith.constant 0 : index
    %c0_0 = arith.constant 0 : index
    %0 = vector.load %arg1[%c0, %c0_0] : memref<16x32xf32, #tpu.memory_space<vmem>>, vector<16x32xf32>
    %c0_1 = arith.constant 0 : index
    %c0_2 = arith.constant 0 : index
    %1 = vector.load %arg2[%c0_1, %c0_2] : memref<32x160xf32, #tpu.memory_space<vmem>>, vector<32x160xf32>
    %cst = arith.constant dense<0.000000e+00> : vector<16x160xf32>
    %2 = tpu.matmul %0, %1, %cst {dimension_numbers = #tpu.dot_dimension_numbers<[1], [0], [0], [1], [0, 0, 1, 1], [], []>} : vector<16x32xf32>, vector<32x160xf32>, vector<16x160xf32> -> vector<16x160xf32>
    %c0_3 = arith.constant 0 : index
    %c0_4 = arith.constant 0 : index
    %3 = vector.load %arg3[%c0_3, %c0_4] : memref<1x160xf32, #tpu.memory_space<vmem>>, vector<1x160xf32>
    %4 = vector.broadcast %3 : vector<1x160xf32> to vector<16x160xf32>
    %5 = arith.addf %2, %4 : vector<16x160xf32>
    %c0_5 = arith.constant 0 : index
    %c0_6 = arith.constant 0 : index
    %6 = vector.load %arg4[%c0_5, %c0_6] : memref<16x160xf32, #tpu.memory_space<vmem>>, vector<16x160xf32>
    tpu.vector_store %arg4[%c0_5, %c0_6], %5 {strides = array<i32>} : memref<16x160xf32, #tpu.memory_space<vmem>>, vector<16x160xf32>,
    return
  }
  func.func @transform_0(%arg0: i32) -> (i32, i32) {
    %c0_i32 = arith.constant 0 : i32
    %c0_i32_0 = arith.constant 0 : i32
    return %arg0, %c0_i32 : i32, i32
  }
  func.func @transform_1(%arg0: i32) -> (i32, i32) {
    %c0_i32 = arith.constant 0 : i32
    %c0_i32_0 = arith.constant 0 : i32
    %c0_i32_1 = arith.constant 0 : i32
    return %c0_i32, %c0_i32_0 : i32, i32
  }
  func.func @transform_2(%arg0: i32) -> (i32, i32) {
    %c0_i32 = arith.constant 0 : i32
    %c0_i32_0 = arith.constant 0 : i32
    %c0_i32_1 = arith.constant 0 : i32
    return %c0_i32, %c0_i32_0 : i32, i32
  }
  func.func @transform_3(%arg0: i32) -> (i32, i32) {
    %c0_i32 = arith.constant 0 : i32
    %c0_i32_0 = arith.constant 0 : i32
    return %arg0, %c0_i32 : i32, i32
  }
}

</mosaic_0001>

<bundles_post_ra>
// kernel: tpu_custom_call.1
= control target key start
LH: loop header
LB: loop body
LE: loop exit
PB: predicated region body
PF: predicated region fallthrough
CT: control target
= control target key end

     0   :  { %8 = vsyncpa [#allocation3], 0  ;;  %s342_s0 = inlined_call_operand.hbm [shape: f32[16,32], index: 0, kind: input, shape index: {}]   ;;  %s343_s1 = inlined_call_operand.hbm [shape: f32[32,160], index: 1, kind: input, shape index: {}]   ;;  %s344_s2 = inlined_call_operand.vmem [shape: f32[1,160], index: 2, kind: input, shape index: {}]   ;;  %s345_s3 = inlined_call_operand.hbm [shape: f32[16,160], index: 3, kind: output, shape index: {}]  }
   0x1   :  { %9 = vsyncpa [#allocation6], 0 }
   0x2   :  { %10 = vsyncpa [#allocation4], 0  ;;  %s265_s12 = smov [#allocation2]   ;;  %s193_s16 = scalar_lea.hbm %s342_s0, 256 }
   0x3   :  { %s16_s13 = sshll.u32 %s265_s12, 4  ;;  %p194_p0 = scmp.ne.s32.totalorder %s342_s0, %s193_s16  ;;  %s17_s13 = int_to_ptr.vmem [resolvable:$true] %s16_s13 }
   0x4   :  { %p197_p1 = scmp.lt.u32.totalorder %s193_s16, %s342_s0 }
   0x6   :  { %p199_p2 = pnand %p197_p1, %p194_p0 }
   0x8   :  { %202 = shalt.err (!%p199_p2)
}
   0x9   :  { %s203_s21 = scalar_lea.vmem %s17_s13, 256  ;;  %p208_p4 = scmp.lt.s32.totalorder %s17_s13, %s17_s13 }
   0xa   :  { %p204_p3 = scmp.ne.s32.totalorder %s17_s13, %s203_s21  ;;  %p209_p5 = scmp.lt.s32.totalorder %s203_s21, %s203_s21 }
   0xc   :  { %p210_p6 = por %p209_p5, %p208_p4 }
   0xe   :  { %p211_p7 = pnand %p210_p6, %p204_p3 }
  0x10   :  { %214 = shalt.err (!%p211_p7)
}
  0x11   :  { %s266_s22 = smov 128   ;;  %s267_s23 = smov 8  }
  0x12   :  { %22 = dma.hbm_to_vmem [thread:$0]  %s342_s0, 256, %s17_s13, [#allocation3], %s266_s22, %s266_s22, %s267_s23  }
  0x13   :  { %s268_s26 = smov [#allocation5]   ;;  %s215_s30 = scalar_lea.hbm %s343_s1, 1024 }
  0x14   :  { %s28_s27 = sshll.u32 %s268_s26, 4  ;;  %p216_p8 = scmp.ne.s32.totalorder %s343_s1, %s215_s30  ;;  %s29_s27 = int_to_ptr.vmem [resolvable:$true] %s28_s27 }
  0x15   :  { %p219_p9 = scmp.lt.u32.totalorder %s215_s30, %s343_s1 }
  0x17   :  { %p221_p10 = pnand %p219_p9, %p216_p8 }
  0x19   :  { %224 = shalt.err (!%p221_p10)
}
  0x1a   :  { %s225_s8 = scalar_lea.vmem %s29_s27, 1024  ;;  %p230_p12 = scmp.lt.s32.totalorder %s29_s27, %s29_s27 }
  0x1b   :  { %p226_p11 = scmp.ne.s32.totalorder %s29_s27, %s225_s8  ;;  %p231_p13 = scmp.lt.s32.totalorder %s225_s8, %s225_s8 }
  0x1d   :  { %p232_p0 = por %p231_p13, %p230_p12 }
  0x1f   :  { %p233_p1 = pnand %p232_p0, %p226_p11 }
  0x21   :  { %236 = shalt.err (!%p233_p1)
}
  0x22   :  { %s269_s0 = smov 256   ;;  %s270_s9 = smov 16  }
  0x23   :  { %34 = dma.hbm_to_vmem [thread:$0]  %s343_s1, 1024, %s29_s27, [#allocation6], %s269_s0, %s269_s0, %s270_s9  }
  0x24   :  { %259 = dma.done.wait [#allocation3], 256  }
  0x25   :  { %260 = vsyncadd [#allocation3], 4294967040 }
  0x26   :  { %261 = dma.done.wait [#allocation6], 1024  }
  0x27   :  { %262 = vsyncadd [#allocation6], 4294966272  ;;  %v271_v0 = vmov 0.0   ;;  %v46_v1 = vld [vmem:[#allocation5 + $0x8] sm:$0xff]  ;;  %v48_v2 = vld [vmem:[#allocation5 + $0x18] sm:$0xff]  ;;  %vm65_vm0 = vcmask 261120   ;;  %v55_v15 = vlaneseq }
  0x28   :  { %136 = vmatprep.mubr.f32.mxu0 %v271_v0  ;;  %142 = vmatprep.mubr.f32.mxu1 %v271_v0  ;;  %v45_v3 = vld [vmem:[#allocation5] sm:$0xff]  ;;  %v173_v4 = vpack.c.bf16 %v48_v2, %v46_v1  ;;  %v47_v5 = vld [vmem:[#allocation5 + $0x10] sm:$0xff]  ;;  %v50_v6 = vld [vmem:[#allocation5 + $0x28] sm:$0xff]  ;;  %s272_s13 = smov [#allocation7]  }
  0x29   :  { %v52_v7 = vld [vmem:[#allocation5 + $0x38] sm:$0xff]  ;;  %v175_v8 = vpack.c.bf16 %v47_v5, %v45_v3  ;;  %v49_v10 = vld [vmem:[#allocation5 + $0x20] sm:$0xff]  ;;  %v51_v11 = vld [vmem:[#allocation5 + $0x30] sm:$0xff]  ;;  %v56_v16 = vshrl.u32 %v55_v15, 7  ;;  %s158_s14 = sshll.u32 %s272_s13, 4  ;;  %s159_s14 = int_to_ptr.vmem [resolvable:$true] %s158_s14 }
  0x2a   :  { %v177_v9 = vpack.c.bf16 %v52_v7, %v50_v6  ;;  %174 = vmatprep.subr.bf16.mxu0 %v173_v4  ;;  %181 = vmatprep.subr.bf16.mxu1 %v173_v4  ;;  %v179_v12 = vpack.c.bf16 %v51_v11, %v49_v10  ;;  %v43_v13 = vld [vmem:[#allocation2] sm:$0xff]  ;;  %v44_v14 = vld [vmem:[#allocation2 + $0x8] sm:$0xff]  ;;  %p242_p3 = scmp.lt.s32.totalorder %s159_s14, %s159_s14 }
  0x2b   :  { %176 = vmatpush1.bf16.msra.mxu0 %v175_v8  ;;  %183 = vmatpush1.bf16.msra.mxu1 %v175_v8  ;;  %v57_v17 = vsub.s32 0, %v56_v16  ;;  %v53_v18 = vld [vmem:[%s344_s2] sm:$0x3]  ;;  %v61_v19 = vsub.s32 1, %v56_v16  ;;  %s237_s2 = scalar_lea.vmem %s159_s14, 512 }
  0x2c   :  { %178 = vmatprep.subr.bf16.mxu0 %v177_v9  ;;  %182 = vmatprep.subr.bf16.mxu1 %v177_v9  ;;  %p238_p2 = scmp.ne.s32.totalorder %s159_s14, %s237_s2  ;;  %p243_p4 = scmp.lt.s32.totalorder %s237_s2, %s237_s2 }
  0x2d   :  { %v58_v20 = vrot.slane %v53_v18, %v57_v17  ;;  %v62_v21 = vrot.slane %v53_v18, %v61_v19 }
  0x2e   :  { %p244_p5 = por %p243_p4, %p242_p3 }
  0x2f   :  { %180 = vmatpush1.bf16.msra.mxu0 %v179_v12  ;;  %184 = vmatpush1.bf16.msra.mxu1 %v179_v12 }
  0x30   :  { %p245_p6 = pnand %p244_p5, %p238_p2 }
  0x32   :  { %171 = vmatmul.mubr.msk.f32.vlgmr.msra.gmra.mrb[0].mxu0 %vm65_vm0, %v43_v13  ;;  %172 = vmatmul.mubr.msk.f32.vlgmr.msra.gmra.mrb[0].mxu1 %vm65_vm0, %v44_v14 }
 0x105   :  { %v138_v22 = vpop.f32.mrb[0].mxu0  ;;  %v144_v23 = vpop.f32.mrb[0].mxu1 }
 0x106   :  { %v139_v24 = vadd.f32 %v138_v22, %v58_v20  ;;  %v145_v25 = vadd.f32 %v144_v23, %v58_v20  ;;  %v140_v26 = vpop.f32.mrb[1].mxu0  ;;  %v146_v27 = vpop.f32.mrb[1].mxu1 }
 0x107   :  { %v141_v28 = vadd.f32 %v140_v26, %v62_v21  ;;  %v147_v29 = vadd.f32 %v146_v27, %v62_v21 }
 0x108   :  { %149 = vst [vmem:[#allocation7] sm:$0xff] %v139_v24  ;;  %151 = vst [vmem:[#allocation7 + $0x10] sm:$0xff] %v145_v25 }
 0x109   :  { %150 = vst.msk [vmem:[#allocation7 + $0x8] sm:$0xff] %vm65_vm0, %v141_v28  ;;  %152 = vst.msk [vmem:[#allocation7 + $0x18] sm:$0xff] %vm65_vm0, %v147_v29 }
 0x10a   :  { %248 = shalt.err (!%p245_p6)
}
 0x10b   :  { %s249_s17 = scalar_lea.hbm %s345_s3, 512 }
 0x10c   :  { %p250_p7 = scmp.ne.s32.totalorder %s345_s3, %s249_s17  ;;  %p253_p8 = scmp.lt.u32.totalorder %s249_s17, %s345_s3 }
 0x10e   :  { %p255_p9 = pnand %p253_p8, %p250_p7 }
 0x110   :  { %258 = shalt.err (!%p255_p9)
}
 0x111   :  { %164 = dma.vmem_to_hbm [thread:$0]  %s159_s14, 512, %s345_s3, [#allocation4], %s269_s0, %s269_s0, %s270_s9  }
 0x112   :  { %263 = dma.done.wait [#allocation4], 512  }
 0x113   :  { %264 = vsyncadd [#allocation4], 4294966784 }
 0x114   :  { %168 = vsyncpa [#allocation3], 1 }
 0x115   :  { %169 = vsyncpa [#allocation6], 1 }
 0x116   :  { %170 = vsyncpa [#allocation4], 1 }

</bundles_post_ra>
